<compile_context>
chip_gen: v7x
topology: tpu7x:2x2x1
jax: 0.10.0
libtpu: 0.0.40
codegen_flags: <defaults>
</compile_context>

<pallas_src>
import functools

import jax
import jax.numpy as jnp
from jax.experimental import pallas as pl
from jax.experimental.pallas import tpu as pltpu


def _round_up(x, m):
    return ((x + m - 1) // m) * m


def _tilted_partial_kernel(x_ref, m_out_ref, s_out_ref, m_sc, s_sc,
                           *, t, n_true, tile_rows, inner_steps):
    """Per-split online log-sum-exp accumulation.

    x_ref:     (tile_rows, 128) block of the (padded) loss values.
    m_out_ref: (1, 1, 1) running max of t*loss for this split   (written at last step).
    s_out_ref: (1, 1, 1) sum of exp(t*loss - m) for this split  (written at last step).
    m_sc/s_sc: (1, 1) f32 VMEM scratch accumulators (persist across inner steps).
    """
    c = pl.program_id(0)   # split index (parallel axis)
    i = pl.program_id(1)   # chunk index within split (arbitrary/reduction axis)

    @pl.when(i == 0)
    def _init():
        m_sc[...] = jnp.full_like(m_sc, -jnp.inf)
        s_sc[...] = jnp.zeros_like(s_sc)

    # Cast per tile (input may be bf16; exp math stays f32).
    x = x_ref[...].astype(jnp.float32)                 # (tile_rows, 128)
    z = t * x

    # Mask padded elements: global flat index >= true element count.
    base = (c * inner_steps + i) * (tile_rows * 128)
    row_ids = jax.lax.broadcasted_iota(jnp.int32, (tile_rows, 128), 0)
    lane_ids = jax.lax.broadcasted_iota(jnp.int32, (tile_rows, 128), 1)
    mask = (base + row_ids * 128 + lane_ids) < n_true

    neg_inf = jnp.float32(-jnp.inf)
    z_masked = jnp.where(mask, z, neg_inf)

    # Online max (sublane reduce on VPU first, then one 128-lane XLU reduce).
    col_max = jnp.max(z_masked, axis=0, keepdims=True)     # (1, 128)
    tile_max = jnp.max(col_max, axis=1, keepdims=True)     # (1, 1)
    m_old = m_sc[...]
    m_new = jnp.maximum(m_old, tile_max)

    # Rescale running sum; guard (-inf) - (-inf) -> nan on all-padding tiles.
    alpha = jnp.where(m_old == neg_inf, 0.0, jnp.exp(m_old - m_new))

    # exp of the shifted values; padded lanes forced to 0 (select, so no nan/inf leaks).
    p = jnp.where(mask, jnp.exp(z - m_new), 0.0)            # (tile_rows, 128)
    col_sum = jnp.sum(p, axis=0, keepdims=True)             # (1, 128)  VPU
    tile_sum = jnp.sum(col_sum, axis=1, keepdims=True)      # (1, 1)    XLU

    s_sc[...] = alpha * s_sc[...] + tile_sum
    m_sc[...] = m_new

    @pl.when(i == inner_steps - 1)
    def _finalize():
        m_out_ref[0] = m_sc[...]
        s_out_ref[0] = s_sc[...]


def tilted_loss(loss, t, *, max_tile_rows=4096, num_splits=2):
    """log(mean(exp(t * loss))) / t  for a 1-D `loss`, t a nonzero Python float."""
    t = float(t)
    inv_t = 1.0 / t          # t == 0 is invalid for TERM (matches torch's div-by-zero)
    lanes = 128

    x = loss.reshape(-1)
    n = int(x.shape[0])
    inv_n = 1.0 / float(n)

    rows = pl.cdiv(n, lanes)
    # Multiple of 16 sublanes: packing-friendly for both f32 and bf16 inputs.
    tile_rows = min(max_tile_rows, _round_up(rows, 16))
    padded_rows = _round_up(rows, num_splits * tile_rows)
    inner_steps = padded_rows // (num_splits * tile_rows)

    pad = padded_rows * lanes - n
    if pad:
        x = jnp.pad(x, (0, pad))          # zeros; masked out inside the kernel
    x = x.reshape(padded_rows, lanes)     # keep caller dtype (bf16 stays bf16)

    kernel = functools.partial(
        _tilted_partial_kernel,
        t=t, n_true=n, tile_rows=tile_rows, inner_steps=inner_steps)

    out_part_spec = pl.BlockSpec((1, 1, 1), lambda c, i: (c, 0, 0))
    m_parts, s_parts = pl.pallas_call(
        kernel,
        out_shape=(
            jax.ShapeDtypeStruct((num_splits, 1, 1), jnp.float32),
            jax.ShapeDtypeStruct((num_splits, 1, 1), jnp.float32),
        ),
        grid_spec=pltpu.PrefetchScalarGridSpec(
            num_scalar_prefetch=0,
            grid=(num_splits, inner_steps),
            in_specs=[pl.BlockSpec((tile_rows, lanes),
                                   lambda c, i: (c * inner_steps + i, 0))],
            out_specs=[out_part_spec, out_part_spec],
            scratch_shapes=[pltpu.VMEM((1, 1), jnp.float32),
                            pltpu.VMEM((1, 1), jnp.float32)]),
        compiler_params=pltpu.CompilerParams(
            dimension_semantics=("parallel", "arbitrary")),
    )(x)

    # Combine the per-split (max, sum) pairs; tiny scalar work, done in plain JAX.
    m_parts = m_parts[:, 0, 0]
    s_parts = s_parts[:, 0, 0]
    m = jnp.max(m_parts)                                   # finite since n >= 1
    w = jnp.where(m_parts == -jnp.inf, 0.0, jnp.exp(m_parts - m))
    s = jnp.sum(s_parts * w)
    return (m + jnp.log(s * inv_n)) * inv_t


if __name__ == "__main__":
    key = jax.random.PRNGKey(0)
    k1, k2 = jax.random.split(key)

    # Case 1: N not a multiple of 128 (exercises padding + masking), t > 0.
    n1, t1 = 1000, 1.5
    loss1 = jax.random.uniform(k1, (n1,), dtype=jnp.float32, minval=0.0, maxval=2.0)
    out1 = jax.block_until_ready(tilted_loss(loss1, t1))
    ref1 = (jax.scipy.special.logsumexp(t1 * loss1) - jnp.log(float(n1))) / t1
    assert jnp.allclose(out1, ref1, rtol=1e-5, atol=1e-5), (out1, ref1)

    # Case 2: negative tilt and large loss values (exercises the stabilized LSE path).
    n2, t2 = 257, -2.0
    loss2 = jax.random.uniform(k2, (n2,), dtype=jnp.float32, minval=0.0, maxval=60.0)
    out2 = jax.block_until_ready(tilted_loss(loss2, t2))
    ref2 = (jax.scipy.special.logsumexp(t2 * loss2) - jnp.log(float(n2))) / t2
    assert jnp.allclose(out2, ref2, rtol=1e-5, atol=1e-5), (out2, ref2)

    print("KERNEL_OK")
</pallas_src>

<mosaic_0001>
module attributes {stable_mosaic.version = 11 : i64} {
  func.func @_tilted_partial_kernel(%arg0: i32, %arg1: i32, %arg2: memref<16x128xf32, #tpu.memory_space<vmem>>, %arg3: memref<1x1x1xf32, #tpu.memory_space<vmem>>, %arg4: memref<1x1x1xf32, #tpu.memory_space<vmem>>, %arg5: memref<1x1xf32, #tpu.memory_space<vmem>>, %arg6: memref<1x1xf32, #tpu.memory_space<vmem>>) attributes {dimension_semantics = [#tpu.dimension_semantics<parallel>, #tpu.dimension_semantics<arbitrary>], iteration_bounds = array<i64: 2, 1>, scalar_prefetch = 0 : i64, scratch_operands = 2 : i64, tpu.core_type = #tpu.core_type<tc>, window_params = [{transform_indices = @transform_0, window_bounds = array<i64: 16, 128>}, {transform_indices = @transform_1, window_bounds = array<i64: 1, 1, 1>}, {transform_indices = @transform_2, window_bounds = array<i64: 1, 1, 1>}]} {
    %c0_i32 = arith.constant 0 : i32
    %0 = arith.cmpi eq, %arg1, %c0_i32 : i32
    %1 = arith.extui %0 : i1 to i32
    %c0_i32_0 = arith.constant 0 : i32
    %2 = arith.cmpi ne, %1, %c0_i32_0 : i32
    scf.if %2 {
      %cst_20 = arith.constant 0xFF800000 : f32
      %49 = vector.broadcast %cst_20 : f32 to vector<1x1xf32>
      %c0_21 = arith.constant 0 : index
      %c0_22 = arith.constant 0 : index
      %50 = vector.load %arg5[%c0_21, %c0_22] : memref<1x1xf32, #tpu.memory_space<vmem>>, vector<1x1xf32>
      tpu.vector_store %arg5[%c0_21, %c0_22], %49 {strides = array<i32>} : memref<1x1xf32, #tpu.memory_space<vmem>>, vector<1x1xf32>,
      %cst_23 = arith.constant 0.000000e+00 : f32
      %51 = vector.broadcast %cst_23 : f32 to vector<1x1xf32>
      %c0_24 = arith.constant 0 : index
      %c0_25 = arith.constant 0 : index
      %52 = vector.load %arg6[%c0_24, %c0_25] : memref<1x1xf32, #tpu.memory_space<vmem>>, vector<1x1xf32>
      tpu.vector_store %arg6[%c0_24, %c0_25], %51 {strides = array<i32>} : memref<1x1xf32, #tpu.memory_space<vmem>>, vector<1x1xf32>,
    } else {
    }
    %c0 = arith.constant 0 : index
    %c0_1 = arith.constant 0 : index
    %3 = vector.load %arg2[%c0, %c0_1] : memref<16x128xf32, #tpu.memory_space<vmem>>, vector<16x128xf32>
    %cst = arith.constant 1.500000e+00 : f32
    %4 = vector.broadcast %cst : f32 to vector<16x128xf32>
    %5 = arith.mulf %4, %3 : vector<16x128xf32>
    %c1_i32 = arith.constant 1 : i32
    %6 = arith.muli %arg0, %c1_i32 : i32
    %7 = arith.addi %6, %arg1 : i32
    %c2048_i32 = arith.constant 2048 : i32
    %8 = arith.muli %7, %c2048_i32 : i32
    %9 = tpu.iota {dimensions = array<i32: 0>} : vector<16x128xi32>
    %10 = tpu.iota {dimensions = array<i32: 1>} : vector<16x128xi32>
    %c128_i32 = arith.constant 128 : i32
    %11 = vector.broadcast %c128_i32 : i32 to vector<16x128xi32>
    %12 = arith.muli %9, %11 : vector<16x128xi32>
    %13 = vector.broadcast %8 : i32 to vector<16x128xi32>
    %14 = arith.addi %13, %12 : vector<16x128xi32>
    %15 = arith.addi %14, %10 : vector<16x128xi32>
    %c1000_i32 = arith.constant 1000 : i32
    %16 = vector.broadcast %c1000_i32 : i32 to vector<16x128xi32>
    %17 = arith.cmpi slt, %15, %16 : vector<16x128xi32>
    %cst_2 = arith.constant 0xFF800000 : f32
    %18 = vector.broadcast %cst_2 : f32 to vector<16x128xf32>
    %19 = arith.select %17, %5, %18 : vector<16x128xi1>, vector<16x128xf32>
    %cst_3 = arith.constant dense<0xFF800000> : vector<128xf32>
    %20 = vector.multi_reduction <maximumf>, %19, %cst_3 [0] : vector<16x128xf32> to vector<128xf32>
    %21 = vector.shape_cast %20 : vector<128xf32> to vector<1x128xf32>
    %cst_4 = arith.constant dense<0xFF800000> : vector<1xf32>
    %22 = vector.multi_reduction <maximumf>, %21, %cst_4 [1] : vector<1x128xf32> to vector<1xf32>
    %23 = vector.shape_cast %22 : vector<1xf32> to vector<1x1xf32>
    %c0_5 = arith.constant 0 : index
    %c0_6 = arith.constant 0 : index
    %24 = vector.load %arg5[%c0_5, %c0_6] : memref<1x1xf32, #tpu.memory_space<vmem>>, vector<1x1xf32>
    %25 = arith.maximumf %24, %23 : vector<1x1xf32>
    %cst_7 = arith.constant 0xFF800000 : f32
    %26 = vector.broadcast %cst_7 : f32 to vector<1x1xf32>
    %27 = arith.cmpf oeq, %24, %26 : vector<1x1xf32>
    %28 = arith.subf %24, %25 : vector<1x1xf32>
    %29 = math.exp %28 : vector<1x1xf32>
    %cst_8 = arith.constant 0.000000e+00 : f32
    %30 = vector.broadcast %cst_8 : f32 to vector<1x1xf32>
    %31 = arith.select %27, %30, %29 : vector<1x1xi1>, vector<1x1xf32>
    %32 = vector.broadcast %25 : vector<1x1xf32> to vector<16x128xf32>
    %33 = arith.subf %5, %32 : vector<16x128xf32>
    %34 = math.exp %33 : vector<16x128xf32>
    %cst_9 = arith.constant 0.000000e+00 : f32
    %35 = vector.broadcast %cst_9 : f32 to vector<16x128xf32>
    %36 = arith.select %17, %34, %35 : vector<16x128xi1>, vector<16x128xf32>
    %cst_10 = arith.constant dense<0.000000e+00> : vector<128xf32>
    %37 = vector.multi_reduction <add>, %36, %cst_10 [0] : vector<16x128xf32> to vector<128xf32>
    %38 = vector.shape_cast %37 : vector<128xf32> to vector<1x128xf32>
    %cst_11 = arith.constant dense<0.000000e+00> : vector<1xf32>
    %39 = vector.multi_reduction <add>, %38, %cst_11 [1] : vector<1x128xf32> to vector<1xf32>
    %40 = vector.shape_cast %39 : vector<1xf32> to vector<1x1xf32>
    %c0_12 = arith.constant 0 : index
    %c0_13 = arith.constant 0 : index
    %41 = vector.load %arg6[%c0_12, %c0_13] : memref<1x1xf32, #tpu.memory_space<vmem>>, vector<1x1xf32>
    %42 = arith.mulf %31, %41 : vector<1x1xf32>
    %43 = arith.addf %42, %40 : vector<1x1xf32>
    %c0_14 = arith.constant 0 : index
    %c0_15 = arith.constant 0 : index
    %44 = vector.load %arg6[%c0_14, %c0_15] : memref<1x1xf32, #tpu.memory_space<vmem>>, vector<1x1xf32>
    tpu.vector_store %arg6[%c0_14, %c0_15], %43 {strides = array<i32>} : memref<1x1xf32, #tpu.memory_space<vmem>>, vector<1x1xf32>,
    %c0_16 = arith.constant 0 : index
    %c0_17 = arith.constant 0 : index
    %45 = vector.load %arg5[%c0_16, %c0_17] : memref<1x1xf32, #tpu.memory_space<vmem>>, vector<1x1xf32>
    tpu.vector_store %arg5[%c0_16, %c0_17], %25 {strides = array<i32>} : memref<1x1xf32, #tpu.memory_space<vmem>>, vector<1x1xf32>,
    %c0_i32_18 = arith.constant 0 : i32
    %46 = arith.cmpi eq, %arg1, %c0_i32_18 : i32
    %47 = arith.extui %46 : i1 to i32
    %c0_i32_19 = arith.constant 0 : i32
    %48 = arith.cmpi ne, %47, %c0_i32_19 : i32
    scf.if %48 {
      %c0_20 = arith.constant 0 : index
      %c0_21 = arith.constant 0 : index
      %49 = vector.load %arg5[%c0_20, %c0_21] : memref<1x1xf32, #tpu.memory_space<vmem>>, vector<1x1xf32>
      %c0_22 = arith.constant 0 : index
      %c0_23 = arith.constant 0 : index
      %c0_24 = arith.constant 0 : index
      %50 = vector.load %arg3[%c0_22, %c0_23, %c0_24] : memref<1x1x1xf32, #tpu.memory_space<vmem>>, vector<1x1x1xf32>
      %51 = vector.shape_cast %50 : vector<1x1x1xf32> to vector<1x1xf32>
      %52 = vector.shape_cast %49 : vector<1x1xf32> to vector<1x1x1xf32>
      tpu.vector_store %arg3[%c0_22, %c0_23, %c0_24], %52 {strides = array<i32>} : memref<1x1x1xf32, #tpu.memory_space<vmem>>, vector<1x1x1xf32>,
      %c0_25 = arith.constant 0 : index
      %c0_26 = arith.constant 0 : index
      %53 = vector.load %arg6[%c0_25, %c0_26] : memref<1x1xf32, #tpu.memory_space<vmem>>, vector<1x1xf32>
      %c0_27 = arith.constant 0 : index
      %c0_28 = arith.constant 0 : index
      %c0_29 = arith.constant 0 : index
      %54 = vector.load %arg4[%c0_27, %c0_28, %c0_29] : memref<1x1x1xf32, #tpu.memory_space<vmem>>, vector<1x1x1xf32>
      %55 = vector.shape_cast %54 : vector<1x1x1xf32> to vector<1x1xf32>
      %56 = vector.shape_cast %53 : vector<1x1xf32> to vector<1x1x1xf32>
      tpu.vector_store %arg4[%c0_27, %c0_28, %c0_29], %56 {strides = array<i32>} : memref<1x1x1xf32, #tpu.memory_space<vmem>>, vector<1x1x1xf32>,
    } else {
    }
    return
  }
  func.func @transform_0(%arg0: i32, %arg1: i32) -> (i32, i32) {
    %c1_i32 = arith.constant 1 : i32
    %0 = arith.muli %arg0, %c1_i32 : i32
    %1 = arith.addi %0, %arg1 : i32
    %c0_i32 = arith.constant 0 : i32
    %c0_i32_0 = arith.constant 0 : i32
    return %1, %c0_i32 : i32, i32
  }
  func.func @transform_1(%arg0: i32, %arg1: i32) -> (i32, i32, i32) {
    %c0_i32 = arith.constant 0 : i32
    %c0_i32_0 = arith.constant 0 : i32
    %c0_i32_1 = arith.constant 0 : i32
    return %arg0, %c0_i32, %c0_i32_0 : i32, i32, i32
  }
  func.func @transform_2(%arg0: i32, %arg1: i32) -> (i32, i32, i32) {
    %c0_i32 = arith.constant 0 : i32
    %c0_i32_0 = arith.constant 0 : i32
    %c0_i32_1 = arith.constant 0 : i32
    return %arg0, %c0_i32, %c0_i32_0 : i32, i32, i32
  }
}

</mosaic_0001>

<bundles_post_ra>
// kernel: tpu_custom_call.1
= control target key start
LH: loop header
LB: loop body
LE: loop exit
PB: predicated region body
PF: predicated region fallthrough
CT: control target
= control target key end

     0   :  { %8 = vsyncpa [#allocation5], 0  ;;  %s688_s0 = inlined_call_operand.hbm [shape: f32[32,128], index: 0, kind: input, shape index: {}]   ;;  %s689_s1 = inlined_call_operand.vmem [shape: f32[2,1,1], index: 1, kind: output, shape index: {0}]   ;;  %s690_s2 = inlined_call_operand.vmem [shape: f32[2,1,1], index: 2, kind: output, shape index: {1}]  }
   0x1   :  { %10 = vsyncpa [#allocation5 + $0x1], 0  ;;  %s546_s9 = smov 0   ;;  %s548_s10 = smov 0  }
   0x2   :  { %s550_s11 = smov 0   ;;  %s552_s12 = smov 0  }
   0x3   :  { %s554_s13 = smov 0   ;;  %s556_s14 = smov 0  }
   0x4 LB: > { %s363_s15 = sadd.s32 4294967295, %s523_s14   ;;  %s28_s16 = sadd.s32 1, %s519_s13  ;;  %s523_s14 = sphi %s556_s14, %s16_s14   ;;  %s519_s13 = sphi %s554_s13, %s698_s13   ;;  %s515_s12 = sphi %s552_s12, %s697_s12   ;;  %s511_s11 = sphi %s550_s11, %s696_s11   ;;  %s507_s10 = sphi %s548_s10, %s695_s10   ;;  %s503_s9 = sphi %s546_s9, %s694_s9  }
   0x5   : > { %p30_p0 = scmp.ge.s32.totalorder %s28_s16, 2  ;;  %s37_s17 = sadd.s32 1, %s511_s11 }
   0x6   : > { %p44_p1 = scmp.ne.s32.totalorder %s511_s11, %s507_s10  ;;  %p45_p2 = scmp.eq.s32.totalorder %s523_s14, 0 }
   0x7   : > { %s700_s16 = smov (%p30_p0, %s28_s16), 0  ;;  %p50_p4 = scmp.ne.s32.totalorder %s507_s10, %s503_s9 }
   0x8   : > { %p582_p3 = por %p45_p2, %p44_p1  ;;  %s34_s19 = ssub.s32 %s519_s13, %s700_s16 }
   0x9   : > { %p51_p5 = scmp.eq.s32.totalorder %s363_s15, 0  ;;  %p35_p6 = scmp.eq.s32.totalorder %s34_s19, 0 }
   0xa   : > { %p382_p8 = scmp.lt.s32.totalorder %s523_s14, 2  ;;  %s126_s22 = sand.u32 1, %s511_s11  }
   0xb   : > { %p589_p7 = por %p51_p5, %p50_p4  ;;  %s375_s23 = sshll.u32 %s519_s13, 8 }
   0xc   : > { %s595_s21 = scalar_select %p35_p6, %s511_s11, %s37_s17  }
   0xd   : > { %s367_s24 = sshll.u32 %s126_s22, 4  ;;  %s602_s27 = scalar_lea.hbm %s688_s0, %s375_s23 }
   0xe   : > { %s130_s28 = scalar_lea.vmem [#allocation4], %s367_s24  ;;  %p606_p9 = pnand %p382_p8, %p582_p3 }
   0xf   : > { %s138_s29 = sshll.u32 %s130_s28, 4  ;;  %s612_s3 = scalar_lea.sflag [#allocation5], %s126_s22  ;;  %s610_s29 = int_to_ptr.vmem [resolvable:$true] %s138_s29 }
  0x10   : > { %s443_s4 = scalar_lea.hbm %s602_s27, 256  ;;  %p445_p11 = pneg %p606_p9 }
  0x11   : > { %p444_p10 = scmp.ne.s32.totalorder %s602_s27, %s443_s4  ;;  %s448_s7 = scalar_lea.hbm %s688_s0, 512 }
  0x12   : > { %p449_p0 = scmp.lt.u32.totalorder %s602_s27, %s688_s0  ;;  %p450_p1 = scmp.lt.u32.totalorder %s448_s7, %s443_s4 }
  0x13   : > { %p446_p12 = pnand %p445_p11, %p444_p10  ;;  %p452_p3 = scmp.lt.u32.totalorder %s443_s4, %s602_s27 }
  0x14   : > { %p451_p2 = por %p450_p1, %p449_p0 }
  0x15   : > { %p447_p13 = pneg %p446_p12 }
  0x16   : > { %p453_p4 = por %p452_p3, %p451_p2 }
  0x18   : > { %p454_p5 = pnand %p453_p4, %p447_p13 }
  0x1a   : > { %457 = shalt.err (!%p454_p5)
}
  0x1b   : > { %s458_s15 = scalar_lea.vmem %s610_s29, 256  ;;  %s525_s17 = smov [#allocation4]  }
  0x1c   : > { %p459_p6 = scmp.ne.s32.totalorder %s610_s29, %s458_s15  ;;  %s463_s18 = sshll.u32 %s525_s17, 4  ;;  %s464_s18 = int_to_ptr.vmem [resolvable:$false] %s463_s18 }
  0x1d   : > { %s465_s19 = scalar_lea.vmem %s464_s18, 512  ;;  %p466_p12 = scmp.lt.s32.totalorder %s610_s29, %s464_s18 }
  0x1e   : > { %p461_p8 = pnand %p459_p6, %p445_p11  ;;  %p467_p0 = scmp.lt.s32.totalorder %s465_s19, %s458_s15 }
  0x20   : > { %p462_p10 = pneg %p461_p8  ;;  %p468_p1 = por %p467_p0, %p466_p12 }
  0x22   : > { %p469_p2 = pnand %p468_p1, %p462_p10 }
  0x24   : > { %472 = shalt.err (!%p469_p2)
}
  0x25   : > { %s526_s22 = smov 128   ;;  %s527_s23 = smov 8  }
  0x26   : > { %381 = dma.hbm_to_vmem [thread:$0]  (!%p606_p9), %s602_s27, 256, %s610_s29, %s612_s3, %s526_s22, %s526_s22, %s527_s23  }
  0x27   : > { %p370_p11 = scmp.ge.s32.totalorder %s523_s14, 1  ;;  %p146_p13 = scmp.lt.s32.totalorder %s523_s14, 3 }
  0x29   : > { %p147_p3 = pnand %p370_p11, %p146_p13 }
  0x2a   : > { %s152_s24 = sand.u32 (!%p147_p3), 1, %s507_s10  }
  0x2b   : > { %150 = sbr.rel (%p147_p3) target bundleno = 537 (0x219), region = 24  ;;  %s371_s25 = sshll.u32 (!%p147_p3), %s152_s24, 4 }
  0x2c   : > { %s153_s26 = scalar_lea.sflag (!%p147_p3), [#allocation5], %s152_s24  ;;  %s156_s28 = scalar_lea.vmem (!%p147_p3), [#allocation4], %s371_s25 }
  0x32   : > { %498 = dma.done.wait (%p589_p7), %s153_s26, 256  }
  0x33   : > { %500 = vsyncadd (%p589_p7), %s153_s26, 4294967040  ;;  %s372_s4 = sshll.u32 %s515_s12, 11  ;;  %v199_v0 = vlaneseq  ;;  %vm190_vm0 = vcmask 0   ;;  %v528_v1 = vmov -inf   ;;  %v193_v9 = vld [vmem:[%s156_s28] sm:$0xff]  ;;  %v194_v10 = vld [vmem:[%s156_s28 + $0x8] sm:$0xff] }
  0x34   : > { %191 = vst.msk [vmem:[#allocation2] sm:$0x1] %vm190_vm0, %v528_v1  ;;  %v206_v3 = vstv %s372_s4  ;;  %v195_v11 = vmul.f32 1.5, %v193_v9  ;;  %v196_v14 = vmul.f32 1.5, %v194_v10  ;;  %v529_v25 = vmov 0   ;;  %p180_p7 = scmp.lt.s32.totalorder %s515_s12, 1 }
  0x35   : > { %v200_v2 = vshrl.u32 %v199_v0, 7  ;;  %v203_v5 = vand.u32 127, %v199_v0  ;;  %436 = vset.pattern.permute.xlu0 %v529_v25  ;;  %v530_v26 = vmov 0.0  }
  0x36   : > { %192 = vst.msk [vmem:[#allocation3] sm:$0x1] %vm190_vm0, %v530_v26  ;;  %s702_s12 = smov (!%p180_p7, %s515_s12), 1 }
  0x37   : > { %v201_v4 = vadd.s32 8, %v200_v2  ;;  %v204_v6 = vmul.u32 128, %v200_v2  ;;  %v234_v28 = vsub.s32 0, %v200_v2  ;;  %s182_s29 = scalar_lea.vmem %s689_s1, %s702_s12  ;;  %s185_s5 = scalar_lea.vmem %s690_s2, %s702_s12 }
  0x39   : > { %v205_v7 = vmul.u32 128, %v201_v4  ;;  %v207_v8 = vadd.s32 %v206_v3, %v204_v6 }
  0x3b   : > { %v208_v12 = vadd.s32 %v206_v3, %v205_v7  ;;  %v209_v13 = vadd.s32 %v207_v8, %v203_v5  ;;  %v224_v27 = vld [vmem:[#allocation2] sm:$0x1] }
  0x3c   : > { %vm226_vm3 = vcmp.eq.f32.partialorder %v224_v27, -inf }
  0x3d   : > { %v210_v15 = vadd.s32 %v208_v12, %v203_v5  ;;  %vm211_vm1 = vcmp.lt.s32.totalorder %v209_v13, 1000  ;;  %v257_v52 = vld [vmem:[#allocation3] sm:$0x1] }
  0x3e   : > { %v213_v16 = vsel %vm211_vm1, %v195_v11, -inf }
  0x3f   : > { %vm212_vm2 = vcmp.lt.s32.totalorder %v210_v15, 1000 }
  0x40   : > { %v214_v17 = vsel %vm212_vm2, %v196_v14, -inf }
  0x41   : > { %v215_v18 = vmax.f32 %v213_v16, %v214_v17 }
  0x43   : > { %v216_v19 = vrot.slane %v215_v18, 4 }
  0x45   : > { %v217_v20 = vmax.f32 %v215_v18, %v216_v19 }
  0x47   : > { %v218_v21 = vrot.slane %v217_v20, 2 }
  0x49   : > { %v219_v22 = vmax.f32 %v217_v20, %v218_v21 }
  0x4b   : > { %v220_v23 = vrot.slane %v219_v22, 1 }
  0x4d   : > { %v221_v24 = vmax.f32 %v219_v22, %v220_v23 }
  0x4f   : > { %222 = vmax.xlane.f32.xlu0 %v221_v24 }
  0xdc   : > { %v223_v29 = vpop.xlane.xlu0 %222 }
  0xdd   : > { %v225_v30 = vmax.f32 %v224_v27, %v223_v29 }
  0xdf   : > { %262 = vst.msk [vmem:[#allocation2] sm:$0x1] %vm190_vm0, %v225_v30  ;;  %v235_v31 = vrot.slane %v225_v30, %v234_v28  ;;  %v227_v49 = vsub.f32 %v224_v27, %v225_v30 }
  0xe1   : > { %237 = vperm.xlu0 %436, %v235_v31   ;;  %v228_v50 = vmul.f32 1.442695, %v227_v49 }
  0xe6   : > { %v266_v32 = vld [vmem:[#allocation2] sm:$0x1] }
  0xe7   : > { %267 = vst.msk [vmem:[%s182_s29] sm:$0x1] %vm190_vm0, %v266_v32 }
 0x160   : > { %v238_v33 = vpop.permute.xlu0 %237 }
 0x161   : > { %v240_v34 = vsub.f32 %v195_v11, %v238_v33  ;;  %v241_v35 = vsub.f32 %v196_v14, %v238_v33 }
 0x163   : > { %v242_v36 = vmul.f32 1.442695, %v240_v34  ;;  %v244_v37 = vmul.f32 1.442695, %v241_v35 }
 0x165   : > { %437 = vpow2.f32 %v242_v36 }
 0x166   : > { %439 = vpow2.f32 %v244_v37 }
 0x167   : > { %441 = vpow2.f32 %v228_v50 }
 0x16f   : > { %v438_v38 = vpop.eup %437 }
 0x170   : > { %v440_v39 = vpop.eup %439  ;;  %v246_v40 = vsel %vm211_vm1, %v438_v38, 0.0 }
 0x171   : > { %v247_v41 = vsel %vm212_vm2, %v440_v39, 0.0  ;;  %v442_v51 = vpop.eup %441 }
 0x172   : > { %v248_v42 = vadd.f32 %v247_v41, %v246_v40  ;;  %v230_v53 = vsel %vm226_vm3, 0.0, %v442_v51 }
 0x173   : > { %v258_v54 = vmul.f32 %v257_v52, %v230_v53 }
 0x174   : > { %v249_v43 = vrot.slane %v248_v42, 4 }
 0x176   : > { %v250_v44 = vadd.f32 %v249_v43, %v248_v42 }
 0x178   : > { %v251_v45 = vrot.slane %v250_v44, 2 }
 0x17a   : > { %v252_v46 = vadd.f32 %v251_v45, %v250_v44 }
 0x17c   : > { %v253_v47 = vrot.slane %v252_v46, 1 }
 0x17e   : > { %v254_v48 = vadd.f32 %v253_v47, %v252_v46 }
 0x180   : > { %255 = vadd.xlane.f32.xlu1 %v254_v48 }
 0x20d   : > { %v256_v55 = vpop.xlane.xlu1 %255 }
 0x20e   : > { %v259_v56 = vadd.f32 %v258_v54, %v256_v55 }
 0x210   : > { %261 = vst.msk [vmem:[#allocation3] sm:$0x1] %vm190_vm0, %v259_v56 }
 0x217   : > { %v268_v57 = vld [vmem:[#allocation3] sm:$0x1] }
 0x218   : > { %269 = vst.msk [vmem:[%s185_s5] sm:$0x1] %vm190_vm0, %v268_v57 }
 0x219 PF: > { %s16_s14 = sadd.s32 1, %s523_s14   ;;  %s694_s9 = smov %s507_s10 }
 0x21a   : > { %p13_p9 = scmp.ge.s32.totalorder %s16_s14, 4   ;;  %s695_s10 = smov %s511_s11 }
 0x21b   : > { %s696_s11 = smov %s595_s21  ;;  %s697_s12 = smov %s519_s13 }
 0x21c   : > { %s698_s13 = smov %s700_s16  ;;  %15 = sbr.rel (!%p13_p9) target bundleno = 4 (0x4), region = 84 }
 0x223   :  { %299 = vsyncpa [#allocation5], 1 }
 0x224   :  { %301 = vsyncpa [#allocation5 + $0x1], 1 }

</bundles_post_ra>
